<compile_context>
chip_gen: v7x
topology: tpu7x:2x2x1
jax: 0.10.0
libtpu: 0.0.40
codegen_flags: <defaults>
</compile_context>

<pallas_src>
import jax
import jax.numpy as jnp
from jax.experimental import pallas as pl
from jax.experimental.pallas import tpu as pltpu

NUM_INPUTS = 3
NUM_HIDDEN = 5
NUM_OUTPUTS = 5


def _round_up(n, m):
    return ((n + m - 1) // m) * m


def mlp_kernel(x_ref, w1_ref, b1_ref, w2_ref, b2_ref, o_ref):
    # x_ref:  (NUM_INPUTS, TILE_B)   feature-major, batch on lanes
    # w1_ref: (NUM_HIDDEN, NUM_INPUTS), b1_ref: (NUM_HIDDEN, 1)
    # w2_ref: (NUM_OUTPUTS, NUM_HIDDEN), b2_ref: (NUM_OUTPUTS, 1)
    # o_ref:  (NUM_OUTPUTS, TILE_B)
    x = x_ref[...]
    w1 = w1_ref[...]
    w2 = w2_ref[...]
    b1 = b1_ref[...]
    b2 = b2_ref[...]

    # Linear 1 (W1 @ x) unrolled on the VPU: K = NUM_INPUTS = 3 terms.
    h = w1[:, 0:1] * x[0:1, :]
    for k in range(1, NUM_INPUTS):
        h = h + w1[:, k:k + 1] * x[k:k + 1, :]
    h = jnp.maximum(h + b1, 0.0)  # bias add + ReLU

    # Linear 2 (W2 @ h) unrolled on the VPU: K = NUM_HIDDEN = 5 terms.
    y = w2[:, 0:1] * h[0:1, :]
    for j in range(1, NUM_HIDDEN):
        y = y + w2[:, j:j + 1] * h[j:j + 1, :]
    y = y + b2

    o_ref[...] = y.astype(o_ref.dtype)


def neural_network_forward(x, w1, b1, w2, b2, tile_b=2048):
    """x: (B, NUM_INPUTS) or any (B, ...) that flattens to NUM_INPUTS features.
    Returns (B, NUM_OUTPUTS) float32, same math as the PyTorch module."""
    B = x.shape[0]
    x2d = x.reshape(B, -1).astype(jnp.float32)  # nn.Flatten()
    assert x2d.shape[1] == NUM_INPUTS

    # Pick a lane-aligned batch tile and pad B up to a whole number of tiles.
    if B <= tile_b:
        tile = _round_up(max(B, 1), 128)
        b_pad = tile
    else:
        tile = tile_b
        b_pad = _round_up(B, tile)

    # Feature-major (lane-dense) layout with zero padding on the batch axis.
    xt = jnp.zeros((NUM_INPUTS, b_pad), jnp.float32).at[:, :B].set(x2d.T)
    b1c = b1.reshape(NUM_HIDDEN, 1).astype(jnp.float32)
    b2c = b2.reshape(NUM_OUTPUTS, 1).astype(jnp.float32)
    w1f = w1.astype(jnp.float32)
    w2f = w2.astype(jnp.float32)

    grid = (b_pad // tile,)
    out_t = pl.pallas_call(
        mlp_kernel,
        out_shape=jax.ShapeDtypeStruct((NUM_OUTPUTS, b_pad), jnp.float32),
        grid_spec=pltpu.PrefetchScalarGridSpec(
            num_scalar_prefetch=0,
            grid=grid,
            in_specs=[
                pl.BlockSpec((NUM_INPUTS, tile), lambda i: (0, i)),       # x tile
                pl.BlockSpec((NUM_HIDDEN, NUM_INPUTS), lambda i: (0, 0)),  # W1 resident
                pl.BlockSpec((NUM_HIDDEN, 1), lambda i: (0, 0)),           # b1 resident
                pl.BlockSpec((NUM_OUTPUTS, NUM_HIDDEN), lambda i: (0, 0)), # W2 resident
                pl.BlockSpec((NUM_OUTPUTS, 1), lambda i: (0, 0)),          # b2 resident
            ],
            out_specs=pl.BlockSpec((NUM_OUTPUTS, tile), lambda i: (0, i)),
        ),
        compiler_params=pltpu.CompilerParams(
            dimension_semantics=("parallel",),  # batch axis: shard across TCs on v7x
        ),
    )(xt, w1f, b1c, w2f, b2c)

    # Back to PyTorch layout (B, NUM_OUTPUTS), dropping the batch padding.
    return out_t[:, :B].T


def init_params(key):
    """Deterministic init matching PyTorch nn.Linear shapes/convention."""
    k1, k2, k3, k4 = jax.random.split(key, 4)
    bound1 = 1.0 / jnp.sqrt(NUM_INPUTS)
    bound2 = 1.0 / jnp.sqrt(NUM_HIDDEN)
    w1 = jax.random.uniform(k1, (NUM_HIDDEN, NUM_INPUTS), jnp.float32, -bound1, bound1)
    b1 = jax.random.uniform(k2, (NUM_HIDDEN,), jnp.float32, -bound1, bound1)
    w2 = jax.random.uniform(k3, (NUM_OUTPUTS, NUM_HIDDEN), jnp.float32, -bound2, bound2)
    b2 = jax.random.uniform(k4, (NUM_OUTPUTS,), jnp.float32, -bound2, bound2)
    return w1, b1, w2, b2


def _ref_forward(x, w1, b1, w2, b2):
    x2d = x.reshape(x.shape[0], -1)
    return jnp.maximum(x2d @ w1.T + b1, 0.0) @ w2.T + b2


if __name__ == "__main__":
    key = jax.random.PRNGKey(0)
    k_x, k_x2, k_p = jax.random.split(key, 3)
    w1, b1, w2, b2 = init_params(k_p)

    # Small batch (single tile, padded to 128 lanes).
    B = 8
    x = jax.random.normal(k_x, (B, NUM_INPUTS), dtype=jnp.float32)
    out = jax.block_until_ready(neural_network_forward(x, w1, b1, w2, b2))
    ref = _ref_forward(x, w1, b1, w2, b2)
    assert out.shape == (B, NUM_OUTPUTS)
    assert jnp.allclose(out, ref, atol=1e-5, rtol=1e-5)

    # Larger, non-multiple batch to exercise the multi-tile grid + padding path.
    B2 = 4100
    x2 = jax.random.normal(k_x2, (B2, NUM_INPUTS), dtype=jnp.float32)
    out2 = jax.block_until_ready(neural_network_forward(x2, w1, b1, w2, b2))
    ref2 = _ref_forward(x2, w1, b1, w2, b2)
    assert out2.shape == (B2, NUM_OUTPUTS)
    assert jnp.allclose(out2, ref2, atol=1e-5, rtol=1e-5)

    print("KERNEL_OK")
</pallas_src>

<mosaic_0001>
module attributes {stable_mosaic.version = 11 : i64} {
  func.func @mlp_kernel(%arg0: i32, %arg1: memref<3x128xf32, #tpu.memory_space<vmem>>, %arg2: memref<5x3xf32, #tpu.memory_space<vmem>>, %arg3: memref<5x1xf32, #tpu.memory_space<vmem>>, %arg4: memref<5x5xf32, #tpu.memory_space<vmem>>, %arg5: memref<5x1xf32, #tpu.memory_space<vmem>>, %arg6: memref<5x128xf32, #tpu.memory_space<vmem>>) attributes {dimension_semantics = [#tpu.dimension_semantics<parallel>], iteration_bounds = array<i64: 1>, scalar_prefetch = 0 : i64, scratch_operands = 0 : i64, tpu.core_type = #tpu.core_type<tc>, window_params = [{transform_indices = @transform_0, window_bounds = array<i64: 3, 128>}, {pipeline_mode = #tpu.pipeline_mode<synchronous>, transform_indices = @transform_1, window_bounds = array<i64: 5, 3>}, {pipeline_mode = #tpu.pipeline_mode<synchronous>, transform_indices = @transform_2, window_bounds = array<i64: 5, 1>}, {pipeline_mode = #tpu.pipeline_mode<synchronous>, transform_indices = @transform_3, window_bounds = array<i64: 5, 5>}, {pipeline_mode = #tpu.pipeline_mode<synchronous>, transform_indices = @transform_4, window_bounds = array<i64: 5, 1>}, {transform_indices = @transform_5, window_bounds = array<i64: 5, 128>}]} {
    %c0 = arith.constant 0 : index
    %c0_0 = arith.constant 0 : index
    %0 = vector.load %arg1[%c0, %c0_0] : memref<3x128xf32, #tpu.memory_space<vmem>>, vector<3x128xf32>
    %c0_1 = arith.constant 0 : index
    %c0_2 = arith.constant 0 : index
    %1 = vector.load %arg2[%c0_1, %c0_2] : memref<5x3xf32, #tpu.memory_space<vmem>>, vector<5x3xf32>
    %c0_3 = arith.constant 0 : index
    %c0_4 = arith.constant 0 : index
    %2 = vector.load %arg4[%c0_3, %c0_4] : memref<5x5xf32, #tpu.memory_space<vmem>>, vector<5x5xf32>
    %c0_5 = arith.constant 0 : index
    %c0_6 = arith.constant 0 : index
    %3 = vector.load %arg3[%c0_5, %c0_6] : memref<5x1xf32, #tpu.memory_space<vmem>>, vector<5x1xf32>
    %c0_7 = arith.constant 0 : index
    %c0_8 = arith.constant 0 : index
    %4 = vector.load %arg5[%c0_7, %c0_8] : memref<5x1xf32, #tpu.memory_space<vmem>>, vector<5x1xf32>
    %5 = vector.extract_strided_slice %1 {offsets = [0, 0], sizes = [5, 1], strides = [1, 1]} : vector<5x3xf32> to vector<5x1xf32>
    %6 = vector.extract_strided_slice %0 {offsets = [0, 0], sizes = [1, 128], strides = [1, 1]} : vector<3x128xf32> to vector<1x128xf32>
    %7 = vector.broadcast %5 : vector<5x1xf32> to vector<5x128xf32>
    %8 = vector.broadcast %6 : vector<1x128xf32> to vector<5x128xf32>
    %9 = arith.mulf %7, %8 : vector<5x128xf32>
    %10 = vector.extract_strided_slice %1 {offsets = [0, 1], sizes = [5, 1], strides = [1, 1]} : vector<5x3xf32> to vector<5x1xf32>
    %11 = vector.extract_strided_slice %0 {offsets = [1, 0], sizes = [1, 128], strides = [1, 1]} : vector<3x128xf32> to vector<1x128xf32>
    %12 = vector.broadcast %10 : vector<5x1xf32> to vector<5x128xf32>
    %13 = vector.broadcast %11 : vector<1x128xf32> to vector<5x128xf32>
    %14 = arith.mulf %12, %13 : vector<5x128xf32>
    %15 = arith.addf %9, %14 : vector<5x128xf32>
    %16 = vector.extract_strided_slice %1 {offsets = [0, 2], sizes = [5, 1], strides = [1, 1]} : vector<5x3xf32> to vector<5x1xf32>
    %17 = vector.extract_strided_slice %0 {offsets = [2, 0], sizes = [1, 128], strides = [1, 1]} : vector<3x128xf32> to vector<1x128xf32>
    %18 = vector.broadcast %16 : vector<5x1xf32> to vector<5x128xf32>
    %19 = vector.broadcast %17 : vector<1x128xf32> to vector<5x128xf32>
    %20 = arith.mulf %18, %19 : vector<5x128xf32>
    %21 = arith.addf %15, %20 : vector<5x128xf32>
    %22 = vector.broadcast %3 : vector<5x1xf32> to vector<5x128xf32>
    %23 = arith.addf %21, %22 : vector<5x128xf32>
    %cst = arith.constant 0.000000e+00 : f32
    %24 = vector.broadcast %cst : f32 to vector<5x128xf32>
    %25 = arith.maximumf %23, %24 : vector<5x128xf32>
    %26 = vector.extract_strided_slice %2 {offsets = [0, 0], sizes = [5, 1], strides = [1, 1]} : vector<5x5xf32> to vector<5x1xf32>
    %27 = vector.extract_strided_slice %25 {offsets = [0, 0], sizes = [1, 128], strides = [1, 1]} : vector<5x128xf32> to vector<1x128xf32>
    %28 = vector.broadcast %26 : vector<5x1xf32> to vector<5x128xf32>
    %29 = vector.broadcast %27 : vector<1x128xf32> to vector<5x128xf32>
    %30 = arith.mulf %28, %29 : vector<5x128xf32>
    %31 = vector.extract_strided_slice %2 {offsets = [0, 1], sizes = [5, 1], strides = [1, 1]} : vector<5x5xf32> to vector<5x1xf32>
    %32 = vector.extract_strided_slice %25 {offsets = [1, 0], sizes = [1, 128], strides = [1, 1]} : vector<5x128xf32> to vector<1x128xf32>
    %33 = vector.broadcast %31 : vector<5x1xf32> to vector<5x128xf32>
    %34 = vector.broadcast %32 : vector<1x128xf32> to vector<5x128xf32>
    %35 = arith.mulf %33, %34 : vector<5x128xf32>
    %36 = arith.addf %30, %35 : vector<5x128xf32>
    %37 = vector.extract_strided_slice %2 {offsets = [0, 2], sizes = [5, 1], strides = [1, 1]} : vector<5x5xf32> to vector<5x1xf32>
    %38 = vector.extract_strided_slice %25 {offsets = [2, 0], sizes = [1, 128], strides = [1, 1]} : vector<5x128xf32> to vector<1x128xf32>
    %39 = vector.broadcast %37 : vector<5x1xf32> to vector<5x128xf32>
    %40 = vector.broadcast %38 : vector<1x128xf32> to vector<5x128xf32>
    %41 = arith.mulf %39, %40 : vector<5x128xf32>
    %42 = arith.addf %36, %41 : vector<5x128xf32>
    %43 = vector.extract_strided_slice %2 {offsets = [0, 3], sizes = [5, 1], strides = [1, 1]} : vector<5x5xf32> to vector<5x1xf32>
    %44 = vector.extract_strided_slice %25 {offsets = [3, 0], sizes = [1, 128], strides = [1, 1]} : vector<5x128xf32> to vector<1x128xf32>
    %45 = vector.broadcast %43 : vector<5x1xf32> to vector<5x128xf32>
    %46 = vector.broadcast %44 : vector<1x128xf32> to vector<5x128xf32>
    %47 = arith.mulf %45, %46 : vector<5x128xf32>
    %48 = arith.addf %42, %47 : vector<5x128xf32>
    %49 = vector.extract_strided_slice %2 {offsets = [0, 4], sizes = [5, 1], strides = [1, 1]} : vector<5x5xf32> to vector<5x1xf32>
    %50 = vector.extract_strided_slice %25 {offsets = [4, 0], sizes = [1, 128], strides = [1, 1]} : vector<5x128xf32> to vector<1x128xf32>
    %51 = vector.broadcast %49 : vector<5x1xf32> to vector<5x128xf32>
    %52 = vector.broadcast %50 : vector<1x128xf32> to vector<5x128xf32>
    %53 = arith.mulf %51, %52 : vector<5x128xf32>
    %54 = arith.addf %48, %53 : vector<5x128xf32>
    %55 = vector.broadcast %4 : vector<5x1xf32> to vector<5x128xf32>
    %56 = arith.addf %54, %55 : vector<5x128xf32>
    %c0_9 = arith.constant 0 : index
    %c0_10 = arith.constant 0 : index
    %57 = vector.load %arg6[%c0_9, %c0_10] : memref<5x128xf32, #tpu.memory_space<vmem>>, vector<5x128xf32>
    tpu.vector_store %arg6[%c0_9, %c0_10], %56 {strides = array<i32>} : memref<5x128xf32, #tpu.memory_space<vmem>>, vector<5x128xf32>,
    return
  }
  func.func @transform_0(%arg0: i32) -> (i32, i32) {
    %c0_i32 = arith.constant 0 : i32
    %c0_i32_0 = arith.constant 0 : i32
    return %c0_i32, %arg0 : i32, i32
  }
  func.func @transform_1(%arg0: i32) -> (i32, i32) {
    %c0_i32 = arith.constant 0 : i32
    %c0_i32_0 = arith.constant 0 : i32
    %c0_i32_1 = arith.constant 0 : i32
    return %c0_i32, %c0_i32_0 : i32, i32
  }
  func.func @transform_2(%arg0: i32) -> (i32, i32) {
    %c0_i32 = arith.constant 0 : i32
    %c0_i32_0 = arith.constant 0 : i32
    %c0_i32_1 = arith.constant 0 : i32
    return %c0_i32, %c0_i32_0 : i32, i32
  }
  func.func @transform_3(%arg0: i32) -> (i32, i32) {
    %c0_i32 = arith.constant 0 : i32
    %c0_i32_0 = arith.constant 0 : i32
    %c0_i32_1 = arith.constant 0 : i32
    return %c0_i32, %c0_i32_0 : i32, i32
  }
  func.func @transform_4(%arg0: i32) -> (i32, i32) {
    %c0_i32 = arith.constant 0 : i32
    %c0_i32_0 = arith.constant 0 : i32
    %c0_i32_1 = arith.constant 0 : i32
    return %c0_i32, %c0_i32_0 : i32, i32
  }
  func.func @transform_5(%arg0: i32) -> (i32, i32) {
    %c0_i32 = arith.constant 0 : i32
    %c0_i32_0 = arith.constant 0 : i32
    return %c0_i32, %arg0 : i32, i32
  }
}

</mosaic_0001>

<bundles_post_ra>
// kernel: tpu_custom_call.1
= control target key start
LH: loop header
LB: loop body
LE: loop exit
PB: predicated region body
PF: predicated region fallthrough
CT: control target
= control target key end

     0   :  { %v173_v1 = vmov 2   ;;  %v174_v2 = vmov 0   ;;  %s236_s0 = inlined_call_operand.vmem [shape: f32[3,128], index: 0, kind: input, shape index: {}]   ;;  %s237_s1 = inlined_call_operand.vmem [shape: f32[5,3], index: 1, kind: input, shape index: {}]   ;;  %s238_s2 = inlined_call_operand.vmem [shape: f32[5,1], index: 2, kind: input, shape index: {}]   ;;  %s239_s3 = inlined_call_operand.vmem [shape: f32[5,5], index: 3, kind: input, shape index: {}]   ;;  %s240_s4 = inlined_call_operand.vmem [shape: f32[5,1], index: 4, kind: input, shape index: {}]   ;;  %s241_s5 = inlined_call_operand.hbm [shape: f32[5,128], index: 5, kind: output, shape index: {}]  }
   0x1   :  { %v22_v0 = vld [vmem:[%s237_s1] sm:$0x1f]  ;;  %142 = vset.pattern.permute.xlu1 %v173_v1  ;;  %140 = vset.pattern.permute.xlu0 %v174_v2 }
   0x2   :  { %47 = vperm.xlu1 %142, %v22_v0   ;;  %28 = vperm.xlu0 %140, %v22_v0  }
   0x3   :  { %10 = vsyncpa [#allocation3], 0  ;;  %v24_v3 = vld [vmem:[%s238_s2] sm:$0x1f]  ;;  %v175_v4 = vmov 1   ;;  %v176_v6 = vmov 3   ;;  %v31_v9 = vlaneseq }
   0x4   :  { %v23_v5 = vld [vmem:[%s239_s3] sm:$0x1f]  ;;  %v177_v7 = vmov 4  }
   0x5   :  { %v25_v8 = vld [vmem:[%s240_s4] sm:$0x1f]  ;;  %v32_v10 = vshrl.u32 %v31_v9, 7 }
   0x6   :  { %143 = vset.pattern.permute.xlu1 %v174_v2  ;;  %141 = vset.pattern.permute.xlu0 %v175_v4  ;;  %v21_v13 = vld [vmem:[%s236_s0] sm:$0x7]  ;;  %s178_s0 = smov [#allocation2]  }
   0x7   :  { %58 = vperm.xlu1 %143, %v24_v3   ;;  %37 = vperm.xlu0 %141, %v22_v0   ;;  %v33_v11 = vsub.s32 0, %v32_v10  ;;  %v42_v12 = vsub.s32 1, %v32_v10  ;;  %v52_v15 = vsub.s32 2, %v32_v10  ;;  %v99_v30 = vsub.s32 3, %v32_v10  ;;  %s126_s4 = sshll.u32 %s178_s0, 4  ;;  %s127_s4 = int_to_ptr.vmem [resolvable:$true] %s126_s4 }
   0x8   :  { %v109_v39 = vsub.s32 4, %v32_v10  ;;  %s149_s25 = scalar_lea.vmem %s127_s4, 128  ;;  %p154_p1 = scmp.lt.s32.totalorder %s127_s4, %s127_s4 }
   0x9   :  { %v34_v17 = vrot.slane %v21_v13, %v33_v11  ;;  %v43_v18 = vrot.slane %v21_v13, %v42_v12  ;;  %v53_v19 = vrot.slane %v21_v13, %v52_v15  ;;  %p150_p0 = scmp.ne.s32.totalorder %s127_s4, %s149_s25  ;;  %p155_p2 = scmp.lt.s32.totalorder %s149_s25, %s149_s25 }
   0xb   :  { %65 = vperm.xlu1 %143, %v23_v5   ;;  %74 = vperm.xlu0 %141, %v23_v5   ;;  %p156_p3 = por %p155_p2, %p154_p1 }
   0xd   :  { %p157_p4 = pnand %p156_p3, %p150_p0 }
   0xf   :  { %144 = vset.pattern.permute.xlu1 %v173_v1  ;;  %145 = vset.pattern.permute.xlu0 %v176_v6 }
  0x10   :  { %84 = vperm.xlu1 %144, %v23_v5   ;;  %94 = vperm.xlu0 %145, %v23_v5  }
  0x14   :  { %146 = vset.pattern.permute.xlu1 %v177_v7  ;;  %148 = vset.pattern.permute.xlu0 %v174_v2 }
  0x15   :  { %104 = vperm.xlu1 %146, %v23_v5  }
  0x19   :  { %147 = vset.pattern.permute.xlu1 %v174_v2 }
  0x1a   :  { %115 = vperm.xlu1 %147, %v25_v8  }
  0x81   :  { %v29_v14 = vpop.permute.xlu0 %28  ;;  %v48_v16 = vpop.permute.xlu1 %47 }
  0x82   :  { %v35_v22 = vmul.f32 %v34_v17, %v29_v14  ;;  %v54_v24 = vmul.f32 %v53_v19, %v48_v16 }
  0x86   :  { %v59_v20 = vpop.permute.xlu1 %58  ;;  %v38_v21 = vpop.permute.xlu0 %37 }
  0x87   :  { %v44_v23 = vmul.f32 %v43_v18, %v38_v21 }
  0x89   :  { %v45_v25 = vadd.f32 %v44_v23, %v35_v22 }
  0x8a   :  { %v66_v27 = vpop.permute.xlu1 %65  ;;  %v75_v31 = vpop.permute.xlu0 %74 }
  0x8b   :  { %v55_v26 = vadd.f32 %v54_v24, %v45_v25 }
  0x8d   :  { %v61_v28 = vadd.f32 %v59_v20, %v55_v26 }
  0x8f   :  { %v62_v29 = vmax.f32 %v61_v28, 0.0  ;;  %v85_v32 = vpop.permute.xlu1 %84  ;;  %v95_v40 = vpop.permute.xlu0 %94 }
  0x91   :  { %v71_v33 = vrot.slane %v62_v29, %v33_v11  ;;  %v80_v34 = vrot.slane %v62_v29, %v42_v12  ;;  %v90_v35 = vrot.slane %v62_v29, %v52_v15  ;;  %v100_v38 = vrot.slane %v62_v29, %v99_v30 }
  0x92   :  { %v110_v46 = vrot.slane %v62_v29, %v109_v39 }
  0x93   :  { %v72_v36 = vmul.f32 %v71_v33, %v66_v27  ;;  %v81_v37 = vmul.f32 %v80_v34, %v75_v31  ;;  %v91_v42 = vmul.f32 %v90_v35, %v85_v32  ;;  %v101_v45 = vmul.f32 %v100_v38, %v95_v40 }
  0x94   :  { %v105_v43 = vpop.permute.xlu1 %104 }
  0x95   :  { %v82_v41 = vadd.f32 %v81_v37, %v72_v36  ;;  %v111_v48 = vmul.f32 %v110_v46, %v105_v43 }
  0x97   :  { %v92_v44 = vadd.f32 %v91_v42, %v82_v41 }
  0x99   :  { %v102_v47 = vadd.f32 %v101_v45, %v92_v44  ;;  %v116_v49 = vpop.permute.xlu1 %115 }
  0x9b   :  { %v112_v50 = vadd.f32 %v111_v48, %v102_v47 }
  0x9d   :  { %v118_v51 = vadd.f32 %v116_v49, %v112_v50 }
  0x9f   :  { %119 = vst [vmem:[#allocation2] sm:$0x1f] %v118_v51 }
  0xa0   :  { %160 = shalt.err (!%p157_p4)
}
  0xa1   :  { %s161_s28 = scalar_lea.hbm %s241_s5, 128 }
  0xa2   :  { %p162_p5 = scmp.ne.s32.totalorder %s241_s5, %s161_s28  ;;  %p165_p6 = scmp.lt.u32.totalorder %s161_s28, %s241_s5 }
  0xa4   :  { %p167_p7 = pnand %p165_p6, %p162_p5 }
  0xa6   :  { %170 = shalt.err (!%p167_p7)
}
  0xa7   :  { %129 = dma.vmem_to_hbm [thread:$0]  %s127_s4, 128, %s241_s5, [#allocation3]  }
  0xa8   :  { %171 = dma.done.wait [#allocation3], 128  }
  0xa9   :  { %172 = vsyncadd [#allocation3], 4294967168 }
  0xaa   :  { %133 = vsyncpa [#allocation3], 1 }

</bundles_post_ra>
